<compile_context>
chip_gen: v5e
topology: v5e:2x2
jax: 0.10.0
libtpu: 0.0.40
codegen_flags: <defaults>
</compile_context>

<pallas_src>
import jax
import jax.numpy as jnp
from jax.experimental import pallas as pl
from jax.experimental.pallas import tpu as pltpu


def _round_up(x, m):
    return (x + m - 1) // m * m


def _embed_kernel(xp_ref, w_ref, pb_ref, o_ref):
    # xp_ref: (tp, Kp) f32 patches -> cast to the MXU compute dtype here (hides under DMA,
    #         avoids a separate HBM pad/cast pass over the biggest operand in the wrapper).
    # w_ref : (Kp, Ep) compute dtype, resident weight.
    # pb_ref: (tp, Ep) compute dtype, pos_embed + conv bias.
    # o_ref : (tp, Ep) output dtype.
    x = xp_ref[...].astype(w_ref.dtype)
    acc = jnp.dot(x, w_ref[...], preferred_element_type=jnp.float32)      # MXU, f32 acc
    o_ref[...] = (acc + pb_ref[...].astype(jnp.float32)).astype(o_ref.dtype)  # f32 add


def ast_embedder_forward(x, conv_w, conv_b, pos_embed, *, tstride,
                         compute_dtype=jnp.bfloat16, out_dtype=jnp.float32,
                         row_tile=512):
    """
    x         : (B, T, F) float32
    conv_w    : (E, 1, F, tstride) float32   (PyTorch Conv2d NCHW weight)
    conv_b    : (E,) float32
    pos_embed : (1, P, E) float32, P = (T - tstride)//tstride + 1 (fstride == F)
    returns   : (B, P, E) out_dtype

    row_tile: max rows (patches) per MXU tile. 512 is a good default for v6e/v7x
              (sweep 512-1024 on v6e); use 128-256 on v5e.
    """
    B, T, F = x.shape
    E = conv_w.shape[0]
    P = (T - tstride) // tstride + 1
    K = tstride * F

    # ---- glue (plain JAX): im2col-as-reshape + weight reorg + bias folding ----
    # Valid because kW == tstride (non-overlapping), kH == F, fstride == F (one freq patch).
    x_patches = x[:, : P * tstride, :].reshape(B, P, K)                # k = dt*F + f
    w2 = jnp.transpose(conv_w[:, 0, :, :], (2, 1, 0)).reshape(K, E)    # [dt*F + f, e]
    pos_bias = pos_embed[0].astype(jnp.float32) + conv_b[None, :].astype(jnp.float32)

    # ---- pad to MXU / lane-friendly sizes; balanced row tile so Pp ~= P ----
    Kp = _round_up(K, 128)                       # lane-dense contraction dim
    Ep = _round_up(E, 128)                       # lane-dense output dim (unmasked stores)
    n_p_tiles = pl.cdiv(P, row_tile)
    tp = _round_up(pl.cdiv(P, n_p_tiles), 8)     # balanced, sublane-aligned row tile
    Pp = _round_up(P, tp)
    n_p_tiles = Pp // tp

    if Pp != P or Kp != K:
        # Only materialize a padded copy of x when actually needed (standard AST has
        # K = tstride*F already 128-aligned). x stays f32 here; the bf16 cast is in-kernel.
        x_patches = jnp.pad(x_patches, ((0, 0), (0, Pp - P), (0, Kp - K)))
    w2 = jnp.pad(w2, ((0, Kp - K), (0, Ep - E))).astype(compute_dtype)
    pos_bias = jnp.pad(pos_bias, ((0, Pp - P), (0, Ep - E))).astype(compute_dtype)

    # ---- grid ordering: put the axis with more tiles first ----
    # Patch-major keeps pos_bias resident across the inner batch loop (n_p_tiles fetches
    # instead of B*n_p_tiles); a leading axis with >=2 tiles also lets v7x's two
    # TensorCores shard the grid. v5e/v6e are single-TC, so ordering only affects traffic.
    patch_major = n_p_tiles >= B
    if patch_major:
        grid = (n_p_tiles, B)
        x_map = lambda p, b: (b, p, 0)
        w_map = lambda p, b: (0, 0)
        pb_map = lambda p, b: (p, 0)
        o_map = lambda p, b: (b, p, 0)
    else:
        grid = (B, n_p_tiles)
        x_map = lambda b, p: (b, p, 0)
        w_map = lambda b, p: (0, 0)
        pb_map = lambda b, p: (p, 0)
        o_map = lambda b, p: (b, p, 0)

    # ---- explicit VMEM budget (conservative: weight counted double-buffered),
    #      capped at 40 MiB so it fits v7x's 64 MiB/TC with headroom ----
    cbytes = jnp.dtype(compute_dtype).itemsize
    obytes = jnp.dtype(out_dtype).itemsize
    vmem_need = (2 * tp * Kp * 4            # x tiles (f32, double-buffered)
                 + 2 * Kp * Ep * cbytes     # weight (counted double-buffered, conservative)
                 + 2 * tp * Ep * cbytes     # pos_bias tiles
                 + 2 * tp * Ep * obytes)    # output tiles
    vmem_limit = int(min(max(int(1.5 * vmem_need) + (2 << 20), 16 << 20), 40 << 20))

    # If a profile shows exposed DMA on x, add pipeline_mode=pl.Buffered(3) here and add
    # one extra tp*Kp*4 bytes to vmem_need.
    x_spec = pl.BlockSpec((None, tp, Kp), x_map)
    pb_spec = pl.BlockSpec((tp, Ep), pb_map)
    o_spec = pl.BlockSpec((None, tp, Ep), o_map)

    def _run(weight_spec):
        return pl.pallas_call(
            _embed_kernel,
            out_shape=jax.ShapeDtypeStruct((B, Pp, Ep), out_dtype),
            grid_spec=pltpu.PrefetchScalarGridSpec(
                num_scalar_prefetch=0,
                grid=grid,
                in_specs=[x_spec, weight_spec, pb_spec],
                out_specs=o_spec,
            ),
            compiler_params=pltpu.CompilerParams(
                dimension_semantics=("parallel", "parallel"),
                vmem_limit_bytes=vmem_limit),
        )(x_patches, w2, pos_bias)

    try:
        # Constant index map -> the weight only ever needs one buffer; Buffered(1) drops
        # the useless second Kp x Ep buffer (~3 MiB bf16 at AST scale; matters on v7x).
        out_padded = _run(pl.BlockSpec((Kp, Ep), w_map, pipeline_mode=pl.Buffered(1)))
    except Exception:
        # Fallback if this JAX version rejects single-buffering here; the VMEM estimate
        # above already budgets the weight double-buffered, so the limit stays honest.
        out_padded = _run(pl.BlockSpec((Kp, Ep), w_map))

    return out_padded[:, :P, :E]


def _reference_forward(x, conv_w, conv_b, pos_embed, *, tstride):
    """Plain-JAX reference replicating the PyTorch forward (eval mode)."""
    B, T, F = x.shape
    P = (T - tstride) // tstride + 1
    x_patches = x[:, : P * tstride, :].reshape(B, P, tstride, F)
    out = jnp.einsum("bptf,eft->bpe", x_patches, conv_w[:, 0, :, :]) + conv_b
    return out + pos_embed


if __name__ == "__main__":
    # Small shapes consistent with the module:
    #   input_fdim = F = 16, tstride = 2, fstride = F (-> 1 freq patch),
    #   input_tdim = T = 16, embed_dim = E = 32, batch B = 2.
    B, T, F = 2, 16, 16
    tstride = 2
    E = 32
    P = (T - tstride) // tstride + 1   # = 8

    key = jax.random.PRNGKey(0)
    k_x, k_w, k_b, k_p = jax.random.split(key, 4)

    # Deterministic synthetic parameters (shapes match nn.Conv2d / pos_embed init).
    fan_in, fan_out = F * tstride, E
    limit = (6.0 / (fan_in + fan_out)) ** 0.5
    conv_w = jax.random.uniform(k_w, (E, 1, F, tstride), jnp.float32,
                                minval=-limit, maxval=limit)
    conv_b = jax.random.uniform(k_b, (E,), jnp.float32,
                                minval=-1.0 / fan_in ** 0.5,
                                maxval=1.0 / fan_in ** 0.5)
    pos_embed = 0.02 * jax.random.truncated_normal(k_p, -2.0, 2.0, (1, P, E),
                                                   jnp.float32)
    x = jax.random.normal(k_x, (B, T, F), jnp.float32)

    ref = _reference_forward(x, conv_w, conv_b, pos_embed, tstride=tstride)

    # f32 operand path (tight numerical check).
    out_f32 = jax.block_until_ready(
        ast_embedder_forward(x, conv_w, conv_b, pos_embed, tstride=tstride,
                             compute_dtype=jnp.float32))
    assert out_f32.shape == (B, P, E)
    assert jnp.allclose(out_f32, ref, atol=2e-4, rtol=2e-4)

    # bf16 operand path (performance config; f32 accumulate + f32 pos/bias add).
    out_bf16 = jax.block_until_ready(
        ast_embedder_forward(x, conv_w, conv_b, pos_embed, tstride=tstride,
                             compute_dtype=jnp.bfloat16))
    assert out_bf16.shape == (B, P, E)
    assert jnp.allclose(out_bf16, ref, atol=5e-2, rtol=5e-2)

    print("KERNEL_OK")
</pallas_src>

<mosaic_0001>
module attributes {stable_mosaic.version = 11 : i64} {
  func.func @_embed_kernel(%arg0: i32, %arg1: i32, %arg2: memref<1x8x128xf32, #tpu.memory_space<vmem>>, %arg3: memref<128x128xf32, #tpu.memory_space<vmem>>, %arg4: memref<8x128xf32, #tpu.memory_space<vmem>>, %arg5: memref<1x8x128xf32, #tpu.memory_space<vmem>>) attributes {dimension_semantics = [#tpu.dimension_semantics<parallel>, #tpu.dimension_semantics<parallel>], iteration_bounds = array<i64: 2, 1>, scalar_prefetch = 0 : i64, scratch_operands = 0 : i64, tpu.core_type = #tpu.core_type<tc>, window_params = [{transform_indices = @transform_0, window_bounds = array<i64: 1, 8, 128>}, {pipeline_mode = #tpu.pipeline_mode<synchronous>, transform_indices = @transform_1, window_bounds = array<i64: 128, 128>}, {transform_indices = @transform_2, window_bounds = array<i64: 8, 128>}, {transform_indices = @transform_3, window_bounds = array<i64: 1, 8, 128>}]} {
    %c0 = arith.constant 0 : index
    %c0_0 = arith.constant 0 : index
    %c0_1 = arith.constant 0 : index
    %0 = vector.load %arg2[%c0, %c0_0, %c0_1] : memref<1x8x128xf32, #tpu.memory_space<vmem>>, vector<1x8x128xf32>
    %1 = vector.shape_cast %0 : vector<1x8x128xf32> to vector<8x128xf32>
    %c0_2 = arith.constant 0 : index
    %c0_3 = arith.constant 0 : index
    %2 = vector.load %arg3[%c0_2, %c0_3] : memref<128x128xf32, #tpu.memory_space<vmem>>, vector<128x128xf32>
    %cst = arith.constant dense<0.000000e+00> : vector<8x128xf32>
    %3 = tpu.matmul %1, %2, %cst {dimension_numbers = #tpu.dot_dimension_numbers<[1], [0], [0], [1], [0, 0, 1, 1], [], []>} : vector<8x128xf32>, vector<128x128xf32>, vector<8x128xf32> -> vector<8x128xf32>
    %c0_4 = arith.constant 0 : index
    %c0_5 = arith.constant 0 : index
    %4 = vector.load %arg4[%c0_4, %c0_5] : memref<8x128xf32, #tpu.memory_space<vmem>>, vector<8x128xf32>
    %5 = arith.addf %3, %4 : vector<8x128xf32>
    %c0_6 = arith.constant 0 : index
    %c0_7 = arith.constant 0 : index
    %c0_8 = arith.constant 0 : index
    %6 = vector.load %arg5[%c0_6, %c0_7, %c0_8] : memref<1x8x128xf32, #tpu.memory_space<vmem>>, vector<1x8x128xf32>
    %7 = vector.shape_cast %6 : vector<1x8x128xf32> to vector<8x128xf32>
    %8 = vector.shape_cast %5 : vector<8x128xf32> to vector<1x8x128xf32>
    tpu.vector_store %arg5[%c0_6, %c0_7, %c0_8], %8 {strides = array<i32>} : memref<1x8x128xf32, #tpu.memory_space<vmem>>, vector<1x8x128xf32>,
    return
  }
  func.func @transform_0(%arg0: i32, %arg1: i32) -> (i32, i32, i32) {
    %c0_i32 = arith.constant 0 : i32
    %c0_i32_0 = arith.constant 0 : i32
    return %arg0, %arg1, %c0_i32 : i32, i32, i32
  }
  func.func @transform_1(%arg0: i32, %arg1: i32) -> (i32, i32) {
    %c0_i32 = arith.constant 0 : i32
    %c0_i32_0 = arith.constant 0 : i32
    %c0_i32_1 = arith.constant 0 : i32
    return %c0_i32, %c0_i32_0 : i32, i32
  }
  func.func @transform_2(%arg0: i32, %arg1: i32) -> (i32, i32) {
    %c0_i32 = arith.constant 0 : i32
    %c0_i32_0 = arith.constant 0 : i32
    return %arg1, %c0_i32 : i32, i32
  }
  func.func @transform_3(%arg0: i32, %arg1: i32) -> (i32, i32, i32) {
    %c0_i32 = arith.constant 0 : i32
    %c0_i32_0 = arith.constant 0 : i32
    return %arg0, %arg1, %c0_i32 : i32, i32, i32
  }
}

module attributes {stable_mosaic.version = 11 : i64} {
  func.func @_embed_kernel(%arg0: i32, %arg1: i32, %arg2: memref<1x8x128xf32, #tpu.memory_space<vmem>>, %arg3: memref<128x128xf32, #tpu.memory_space<vmem>>, %arg4: memref<8x128xf32, #tpu.memory_space<vmem>>, %arg5: memref<1x8x128xf32, #tpu.memory_space<vmem>>) attributes {dimension_semantics = [#tpu.dimension_semantics<parallel>, #tpu.dimension_semantics<parallel>], iteration_bounds = array<i64: 2, 1>, scalar_prefetch = 0 : i64, scratch_operands = 0 : i64, tpu.core_type = #tpu.core_type<tc>, window_params = [{transform_indices = @transform_0, window_bounds = array<i64: 1, 8, 128>}, {pipeline_mode = #tpu.pipeline_mode<synchronous>, transform_indices = @transform_1, window_bounds = array<i64: 128, 128>}, {transform_indices = @transform_2, window_bounds = array<i64: 8, 128>}, {transform_indices = @transform_3, window_bounds = array<i64: 1, 8, 128>}]} {
    %c0 = arith.constant 0 : index
    %c0_0 = arith.constant 0 : index
    %c0_1 = arith.constant 0 : index
    %0 = vector.load %arg2[%c0, %c0_0, %c0_1] : memref<1x8x128xf32, #tpu.memory_space<vmem>>, vector<1x8x128xf32>
    %1 = vector.shape_cast %0 : vector<1x8x128xf32> to vector<8x128xf32>
    %c0_2 = arith.constant 0 : index
    %c0_3 = arith.constant 0 : index
    %2 = vector.load %arg3[%c0_2, %c0_3] : memref<128x128xf32, #tpu.memory_space<vmem>>, vector<128x128xf32>
    %cst = arith.constant dense<0.000000e+00> : vector<8x128xf32>
    %3 = tpu.matmul %1, %2, %cst {dimension_numbers = #tpu.dot_dimension_numbers<[1], [0], [0], [1], [0, 0, 1, 1], [], []>} : vector<8x128xf32>, vector<128x128xf32>, vector<8x128xf32> -> vector<8x128xf32>
    %c0_4 = arith.constant 0 : index
    %c0_5 = arith.constant 0 : index
    %4 = vector.load %arg4[%c0_4, %c0_5] : memref<8x128xf32, #tpu.memory_space<vmem>>, vector<8x128xf32>
    %5 = arith.addf %3, %4 : vector<8x128xf32>
    %c0_6 = arith.constant 0 : index
    %c0_7 = arith.constant 0 : index
    %c0_8 = arith.constant 0 : index
    %6 = vector.load %arg5[%c0_6, %c0_7, %c0_8] : memref<1x8x128xf32, #tpu.memory_space<vmem>>, vector<1x8x128xf32>
    %7 = vector.shape_cast %6 : vector<1x8x128xf32> to vector<8x128xf32>
    %8 = vector.shape_cast %5 : vector<8x128xf32> to vector<1x8x128xf32>
    tpu.vector_store %arg5[%c0_6, %c0_7, %c0_8], %8 {strides = array<i32>} : memref<1x8x128xf32, #tpu.memory_space<vmem>>, vector<1x8x128xf32>,
    return
  }
  func.func @transform_0(%arg0: i32, %arg1: i32) -> (i32, i32, i32) {
    %c0_i32 = arith.constant 0 : i32
    %c0_i32_0 = arith.constant 0 : i32
    return %arg0, %arg1, %c0_i32 : i32, i32, i32
  }
  func.func @transform_1(%arg0: i32, %arg1: i32) -> (i32, i32) {
    %c0_i32 = arith.constant 0 : i32
    %c0_i32_0 = arith.constant 0 : i32
    %c0_i32_1 = arith.constant 0 : i32
    return %c0_i32, %c0_i32_0 : i32, i32
  }
  func.func @transform_2(%arg0: i32, %arg1: i32) -> (i32, i32) {
    %c0_i32 = arith.constant 0 : i32
    %c0_i32_0 = arith.constant 0 : i32
    return %arg1, %c0_i32 : i32, i32
  }
  func.func @transform_3(%arg0: i32, %arg1: i32) -> (i32, i32, i32) {
    %c0_i32 = arith.constant 0 : i32
    %c0_i32_0 = arith.constant 0 : i32
    return %arg0, %arg1, %c0_i32 : i32, i32, i32
  }
}

</mosaic_0001>

<bundles_post_ra>
// kernel: tpu_custom_call.1
= control target key start
LH: loop header
LB: loop body
LE: loop exit
PB: predicated region body
PF: predicated region fallthrough
CT: control target
= control target key end

     0   :  { %8 = vsyncpa [#allocation3], 0  ;;  %s855_s0 = inlined_call_operand.hbm [shape: f32[2,8,128], index: 0, kind: input, shape index: {}]   ;;  %s856_s1 = inlined_call_operand.hbm [shape: f32[128,128], index: 1, kind: input, shape index: {}]   ;;  %s857_s2 = inlined_call_operand.hbm [shape: f32[8,128], index: 2, kind: input, shape index: {}]   ;;  %s858_s3 = inlined_call_operand.hbm [shape: f32[2,8,128], index: 3, kind: output, shape index: {}]  }
   0x1   :  { %10 = vsyncpa [#allocation3 + $0x1], 0 }
   0x2   :  { %11 = vsyncpa [#allocation6], 0 }
   0x3   :  { %12 = vsyncpa [#allocation4], 0 }
   0x4   :  { %14 = vsyncpa [#allocation4 + $0x1], 0  ;;  %s704_s12 = smov 0   ;;  %s706_s13 = smov 0  }
   0x5   :  { %s708_s14 = smov 0   ;;  %s710_s15 = smov 0  }
   0x6   :  { %s712_s16 = smov 0   ;;  %s714_s17 = smov 0  }
   0x7 LB: > { %s400_s18 = sadd.s32 4294967295, %s678_s17   ;;  %p402_p0 = scmp.ge.s32.totalorder %s678_s17, 1  ;;  %s678_s17 = sphi %s714_s17, %s20_s17   ;;  %s674_s16 = sphi %s712_s16, %s868_s16   ;;  %s670_s15 = sphi %s710_s15, %s867_s15   ;;  %s666_s14 = sphi %s708_s14, %s866_s14   ;;  %s662_s13 = sphi %s706_s13, %s865_s13   ;;  %s658_s12 = sphi %s704_s12, %s864_s12  }
   0x8   : > { %p738_p1 = scmp.eq.s32.totalorder %s400_s18, 0  ;;  %p140_p2 = scmp.lt.s32.totalorder %s678_s17, 3 }
   0x9   : > { %s151_s22 = sshll.u32 %s856_s1, 4  ;;  %s680_s24 = smov [#allocation5]   ;;  %s152_s22 = int_to_ptr.hbm [resolvable:$true] %s151_s22 }
   0xa   : > { %p746_p3 = pnand %p402_p0, %p140_p2  ;;  %s153_s25 = sshll.u32 %s680_s24, 4  ;;  %s154_s25 = int_to_ptr.vmem [resolvable:$true] %s153_s25 }
   0xb   : > { %p405_p6 = scmp.ge.s32.totalorder %s678_s17, 2  ;;  %s168_s28 = sshll.u32 %s857_s2, 4  ;;  %s169_s28 = int_to_ptr.hbm [resolvable:$true] %s168_s28 }
   0xc   : > { %p429_p4 = pneg %p746_p3  ;;  %s681_s29 = smov 128  }
   0xd   : > { %s682_s30 = smov 8   ;;  %s683_s4 = smov [#allocation7]  }
   0xe   : > { %p430_p5 = pnand %p429_p4, %p738_p1  ;;  %s170_s5 = sshll.u32 %s683_s4, 4  ;;  %s171_s5 = int_to_ptr.vmem [resolvable:$true] %s170_s5 }
   0xf   : > { %s32_s6 = sadd.s32 1, %s674_s16  ;;  %s401_s7 = sadd.s32 4294967294, %s678_s17  }
  0x10   : > { %432 = dma.hbm_to_vmem [thread:$0]  (!%p430_p5), %s152_s22, 2048, %s154_s25, [#allocation6], %s681_s29, %s681_s29, %s682_s30  }
  0x11   : > { %435 = dma.hbm_to_vmem [thread:$0]  (!%p430_p5), %s169_s28, 128, %s171_s5, [#allocation6]  }
  0x12   : > { %p34_p7 = scmp.ge.s32.totalorder %s32_s6, 2  ;;  %s41_s8 = sadd.s32 1, %s666_s14 }
  0x13   : > { %p48_p8 = scmp.ne.s32.totalorder %s666_s14, %s662_s13  ;;  %p49_p9 = scmp.eq.s32.totalorder %s678_s17, 0 }
  0x14   : > { %s870_s6 = smov (%p34_p7, %s32_s6), 0  ;;  %p54_p10 = scmp.ne.s32.totalorder %s662_s13, %s658_s12 }
  0x15   : > { %s36_s9 = ssub.s32 %s674_s16, %s870_s6  ;;  %p127_p11 = scmp.eq.s32.totalorder %s400_s18, 1 }
  0x16   : > { %p39_p12 = scmp.eq.s32.totalorder %s36_s9, 0  ;;  %p774_p13 = por %p738_p1, %p54_p10 }
  0x17   : > { %p778_p0 = por %p127_p11, %p48_p8  ;;  %p133_p2 = scmp.eq.s32.totalorder %s401_s7, 1 }
  0x18   : > { %s783_s20 = scalar_select %p39_p12, %s666_s14, %s41_s8  }
  0x19   : > { %p50_p4 = por %p49_p9, %p48_p8  ;;  %p785_p5 = por %p133_p2, %p54_p10 }
  0x1a   : > { %s181_s22 = sand.u32 1, %s666_s14   ;;  %s407_s18 = sshll.u32 %s674_s16, 3 }
  0x1b   : > { %p446_p7 = scmp.lt.s32.totalorder %s678_s17, 2  ;;  %s406_s24 = sshll.u32 %s181_s22, 3 }
  0x1c   : > { %s190_s27 = scalar_lea.hbm %s855_s0, %s407_s18  ;;  %s185_s29 = scalar_lea.vmem [#allocation2], %s406_s24 }
  0x1d   : > { %s192_s28 = sshll.u32 %s190_s27, 4  ;;  %s194_s30 = sshll.u32 %s185_s29, 4  ;;  %s193_s28 = int_to_ptr.hbm [resolvable:$true] %s192_s28  ;;  %s195_s30 = int_to_ptr.vmem [resolvable:$true] %s194_s30 }
  0x1e   : > { %p437_p11 = pnand %p446_p7, %p50_p4  ;;  %s182_s4 = scalar_lea.sflag [#allocation3], %s181_s22 }
  0x1f   : > { %203 = sbr.rel (%p746_p3) target bundleno = 202 (0xca), region = 32  ;;  %s798_s5 = sand.u32 (!%p746_p3), 1, %s662_s13  }
  0x20   : > { %439 = dma.hbm_to_vmem [thread:$0]  (!%p437_p11), %s193_s28, 128, %s195_s30, %s182_s4  }
  0x21   : > { %s409_s7 = sshll.u32 (!%p746_p3), %s798_s5, 3  ;;  %s206_s8 = scalar_lea.sflag (!%p746_p3), [#allocation3], %s798_s5 }
  0x22   : > { %s804_s9 = scalar_lea.vmem (!%p746_p3), [#allocation2], %s409_s7 }
  0x24   : > { %645 = dma.done.wait (%p774_p13), %s206_s8, 128  }
  0x25   : > { %647 = vsyncadd (%p774_p13), %s206_s8, 4294967168 }
  0x26   : > { %649 = dma.done.wait (%p738_p1), [#allocation6], 2176  }
  0x27   : > { %651 = vsyncadd (%p738_p1), [#allocation6], 4294965120  ;;  %v259_v0 = vld [vmem:[#allocation5 + $0x78] sm:$0xff]  ;;  %v258_v1 = vld [vmem:[#allocation5 + $0x70] sm:$0xff]  ;;  %s414_s19 = sshll.u32 %s670_s15, 3  ;;  %s242_s18 = scalar_lea.vmem [#allocation8], %s409_s7 }
  0x28   : > { %261 = vmatpush.msra.mxu0 %v259_v0  ;;  %v257_v2 = vld [vmem:[#allocation5 + $0x68] sm:$0xff]  ;;  %v256_v3 = vld [vmem:[#allocation5 + $0x60] sm:$0xff]  ;;  %v255_v4 = vld [vmem:[#allocation5 + $0x58] sm:$0xff]  ;;  %s294_s22 = scalar_lea.hbm %s858_s3, %s414_s19  ;;  %s296_s24 = sshll.u32 %s242_s18, 4  ;;  %s297_s24 = int_to_ptr.vmem [resolvable:$true] %s296_s24 }
  0x29   : > { %v254_v5 = vld [vmem:[#allocation5 + $0x50] sm:$0xff]  ;;  %v253_v6 = vld [vmem:[#allocation5 + $0x48] sm:$0xff]  ;;  %v252_v7 = vld [vmem:[#allocation5 + $0x40] sm:$0xff]  ;;  %s298_s25 = sshll.u32 %s294_s22, 4  ;;  %s283_s26 = scalar_lea.sflag [#allocation4], %s798_s5  ;;  %s299_s25 = int_to_ptr.hbm [resolvable:$true] %s298_s25 }
  0x2a   : > { %262 = vmatpush.msra.mxu0 %v258_v1  ;;  %v251_v8 = vld [vmem:[#allocation5 + $0x38] sm:$0xff]  ;;  %v250_v9 = vld [vmem:[#allocation5 + $0x30] sm:$0xff]  ;;  %v249_v10 = vld [vmem:[#allocation5 + $0x28] sm:$0xff]  ;;  %s606_s27 = sshra.s32 %s299_s25, 4  ;;  %s612_s30 = scalar_lea.hbm %s858_s3, 16  ;;  %s607_s27 = int_to_ptr.hbm [resolvable:$true] %s606_s27 }
  0x2b   : > { %v248_v11 = vld [vmem:[#allocation5 + $0x20] sm:$0xff]  ;;  %v247_v12 = vld [vmem:[#allocation5 + $0x18] sm:$0xff]  ;;  %v246_v13 = vld [vmem:[#allocation5 + $0x10] sm:$0xff]  ;;  %s608_s28 = scalar_lea.hbm %s607_s27, 8  ;;  %p613_p9 = scmp.lt.s32.totalorder %s607_s27, %s858_s3 }
  0x2c   : > { %263 = vmatpush.msra.mxu0 %v257_v2  ;;  %v245_v14 = vld [vmem:[#allocation5 + $0x8] sm:$0xff]  ;;  %v244_v15 = vld [vmem:[#allocation5] sm:$0xff]  ;;  %v243_v16 = vld [vmem:[%s804_s9] sm:$0xff]  ;;  %p609_p1 = scmp.ne.s32.totalorder %s607_s27, %s608_s28  ;;  %p614_p10 = scmp.lt.s32.totalorder %s612_s30, %s608_s28 }
  0x2d   : > { %v260_v17 = vld [vmem:[#allocation7] sm:$0xff] }
  0x2e   : > { %264 = vmatpush.msra.mxu0 %v256_v3  ;;  %p610_p3 = pnand %p609_p1, %p778_p0  ;;  %p615_p12 = por %p614_p10, %p613_p9 }
  0x30   : > { %265 = vmatpush.msra.mxu0 %v255_v4  ;;  %p611_p8 = pneg %p610_p3 }
  0x32   : > { %266 = vmatpush.msra.mxu0 %v254_v5  ;;  %p616_p13 = pnand %p615_p12, %p611_p8 }
  0x34   : > { %267 = vmatpush.msra.mxu0 %v253_v6 }
  0x36   : > { %268 = vmatpush.msra.mxu0 %v252_v7 }
  0x38   : > { %269 = vmatpush.msra.mxu0 %v251_v8 }
  0x3a   : > { %270 = vmatpush.msra.mxu0 %v250_v9 }
  0x3c   : > { %271 = vmatpush.msra.mxu0 %v249_v10 }
  0x3e   : > { %272 = vmatpush.msra.mxu0 %v248_v11 }
  0x40   : > { %273 = vmatpush.msra.mxu0 %v247_v12 }
  0x42   : > { %274 = vmatpush.msra.mxu0 %v246_v13 }
  0x44   : > { %275 = vmatpush.msra.mxu0 %v245_v14 }
  0x46   : > { %276 = vmatpush.msra.mxu0 %v244_v15 }
  0x47   : > { %277 = vmatmul.f32.vlgmr.msra.gmra.mxu0 %v243_v16 }
  0xc4   : > { %v278_v18 = vpop.f32.mrf.mxu0 }
  0xc5   : > { %v279_v19 = vadd.f32 %v278_v18, %v260_v17 }
  0xc7   : > { %281 = vst [vmem:[%s242_s18] sm:$0xff] %v279_v19 }
  0xc8   : > { %619 = shalt.err (!%p616_p13)
}
  0xc9   : > { %427 = dma.vmem_to_hbm [thread:$0]  (%p778_p0), %s297_s24, 128, %s299_s25, %s283_s26  }
  0xca PF: > { %s310_s5 = sand.u32 1, %s658_s12   ;;  %p441_p2 = pnand %p405_p6, %p785_p5 }
  0xcb   : > { %s311_s8 = scalar_lea.sflag [#allocation4], %s310_s5 }
  0xcc   : > { %p442_p4 = pneg %p441_p2 }
  0xce   : > { %653 = dma.done.wait (%p442_p4), %s311_s8, 128  }
  0xcf   : > { %655 = vsyncadd (%p442_p4), %s311_s8, 4294967168  ;;  %s20_s17 = sadd.s32 1, %s678_s17   ;;  %s864_s12 = smov %s662_s13 }
  0xd0   : > { %p17_p7 = scmp.ge.s32.totalorder %s20_s17, 4   ;;  %s865_s13 = smov %s666_s14 }
  0xd1   : > { %s866_s14 = smov %s783_s20  ;;  %s867_s15 = smov %s674_s16 }
  0xd2   : > { %s868_s16 = smov %s870_s6  ;;  %19 = sbr.rel (!%p17_p7) target bundleno = 7 (0x7), region = 86 }
  0xd7   :  { %317 = vsyncpa [#allocation3], 1 }
  0xd8   :  { %319 = vsyncpa [#allocation3 + $0x1], 1 }
  0xd9   :  { %320 = vsyncpa [#allocation6], 1 }
  0xda   :  { %321 = vsyncpa [#allocation4], 1 }
  0xdb   :  { %323 = vsyncpa [#allocation4 + $0x1], 1 }

// kernel: tpu_custom_call.1
= control target key start
LH: loop header
LB: loop body
LE: loop exit
PB: predicated region body
PF: predicated region fallthrough
CT: control target
= control target key end

     0   :  { %8 = vsyncpa [#allocation3], 0  ;;  %s855_s0 = inlined_call_operand.hbm [shape: f32[2,8,128], index: 0, kind: input, shape index: {}]   ;;  %s856_s1 = inlined_call_operand.hbm [shape: f32[128,128], index: 1, kind: input, shape index: {}]   ;;  %s857_s2 = inlined_call_operand.hbm [shape: f32[8,128], index: 2, kind: input, shape index: {}]   ;;  %s858_s3 = inlined_call_operand.hbm [shape: f32[2,8,128], index: 3, kind: output, shape index: {}]  }
   0x1   :  { %10 = vsyncpa [#allocation3 + $0x1], 0 }
   0x2   :  { %11 = vsyncpa [#allocation6], 0 }
   0x3   :  { %12 = vsyncpa [#allocation4], 0 }
   0x4   :  { %14 = vsyncpa [#allocation4 + $0x1], 0  ;;  %s704_s12 = smov 0   ;;  %s706_s13 = smov 0  }
   0x5   :  { %s708_s14 = smov 0   ;;  %s710_s15 = smov 0  }
   0x6   :  { %s712_s16 = smov 0   ;;  %s714_s17 = smov 0  }
   0x7 LB: > { %s400_s18 = sadd.s32 4294967295, %s678_s17   ;;  %p402_p0 = scmp.ge.s32.totalorder %s678_s17, 1  ;;  %s678_s17 = sphi %s714_s17, %s20_s17   ;;  %s674_s16 = sphi %s712_s16, %s868_s16   ;;  %s670_s15 = sphi %s710_s15, %s867_s15   ;;  %s666_s14 = sphi %s708_s14, %s866_s14   ;;  %s662_s13 = sphi %s706_s13, %s865_s13   ;;  %s658_s12 = sphi %s704_s12, %s864_s12  }
   0x8   : > { %p738_p1 = scmp.eq.s32.totalorder %s400_s18, 0  ;;  %p140_p2 = scmp.lt.s32.totalorder %s678_s17, 3 }
   0x9   : > { %s151_s22 = sshll.u32 %s856_s1, 4  ;;  %s680_s24 = smov [#allocation5]   ;;  %s152_s22 = int_to_ptr.hbm [resolvable:$true] %s151_s22 }
   0xa   : > { %p746_p3 = pnand %p402_p0, %p140_p2  ;;  %s153_s25 = sshll.u32 %s680_s24, 4  ;;  %s154_s25 = int_to_ptr.vmem [resolvable:$true] %s153_s25 }
   0xb   : > { %p405_p6 = scmp.ge.s32.totalorder %s678_s17, 2  ;;  %s168_s28 = sshll.u32 %s857_s2, 4  ;;  %s169_s28 = int_to_ptr.hbm [resolvable:$true] %s168_s28 }
   0xc   : > { %p429_p4 = pneg %p746_p3  ;;  %s681_s29 = smov 128  }
   0xd   : > { %s682_s30 = smov 8   ;;  %s683_s4 = smov [#allocation7]  }
   0xe   : > { %p430_p5 = pnand %p429_p4, %p738_p1  ;;  %s170_s5 = sshll.u32 %s683_s4, 4  ;;  %s171_s5 = int_to_ptr.vmem [resolvable:$true] %s170_s5 }
   0xf   : > { %s32_s6 = sadd.s32 1, %s674_s16  ;;  %s401_s7 = sadd.s32 4294967294, %s678_s17  }
  0x10   : > { %432 = dma.hbm_to_vmem [thread:$0]  (!%p430_p5), %s152_s22, 2048, %s154_s25, [#allocation6], %s681_s29, %s681_s29, %s682_s30  }
  0x11   : > { %435 = dma.hbm_to_vmem [thread:$0]  (!%p430_p5), %s169_s28, 128, %s171_s5, [#allocation6]  }
  0x12   : > { %p34_p7 = scmp.ge.s32.totalorder %s32_s6, 2  ;;  %s41_s8 = sadd.s32 1, %s666_s14 }
  0x13   : > { %p48_p8 = scmp.ne.s32.totalorder %s666_s14, %s662_s13  ;;  %p49_p9 = scmp.eq.s32.totalorder %s678_s17, 0 }
  0x14   : > { %s870_s6 = smov (%p34_p7, %s32_s6), 0  ;;  %p54_p10 = scmp.ne.s32.totalorder %s662_s13, %s658_s12 }
  0x15   : > { %s36_s9 = ssub.s32 %s674_s16, %s870_s6  ;;  %p127_p11 = scmp.eq.s32.totalorder %s400_s18, 1 }
  0x16   : > { %p39_p12 = scmp.eq.s32.totalorder %s36_s9, 0  ;;  %p774_p13 = por %p738_p1, %p54_p10 }
  0x17   : > { %p778_p0 = por %p127_p11, %p48_p8  ;;  %p133_p2 = scmp.eq.s32.totalorder %s401_s7, 1 }
  0x18   : > { %s783_s20 = scalar_select %p39_p12, %s666_s14, %s41_s8  }
  0x19   : > { %p50_p4 = por %p49_p9, %p48_p8  ;;  %p785_p5 = por %p133_p2, %p54_p10 }
  0x1a   : > { %s181_s22 = sand.u32 1, %s666_s14   ;;  %s407_s18 = sshll.u32 %s674_s16, 3 }
  0x1b   : > { %p446_p7 = scmp.lt.s32.totalorder %s678_s17, 2  ;;  %s406_s24 = sshll.u32 %s181_s22, 3 }
  0x1c   : > { %s190_s27 = scalar_lea.hbm %s855_s0, %s407_s18  ;;  %s185_s29 = scalar_lea.vmem [#allocation2], %s406_s24 }
  0x1d   : > { %s192_s28 = sshll.u32 %s190_s27, 4  ;;  %s194_s30 = sshll.u32 %s185_s29, 4  ;;  %s193_s28 = int_to_ptr.hbm [resolvable:$true] %s192_s28  ;;  %s195_s30 = int_to_ptr.vmem [resolvable:$true] %s194_s30 }
  0x1e   : > { %p437_p11 = pnand %p446_p7, %p50_p4  ;;  %s182_s4 = scalar_lea.sflag [#allocation3], %s181_s22 }
  0x1f   : > { %203 = sbr.rel (%p746_p3) target bundleno = 202 (0xca), region = 32  ;;  %s798_s5 = sand.u32 (!%p746_p3), 1, %s662_s13  }
  0x20   : > { %439 = dma.hbm_to_vmem [thread:$0]  (!%p437_p11), %s193_s28, 128, %s195_s30, %s182_s4  }
  0x21   : > { %s409_s7 = sshll.u32 (!%p746_p3), %s798_s5, 3  ;;  %s206_s8 = scalar_lea.sflag (!%p746_p3), [#allocation3], %s798_s5 }
  0x22   : > { %s804_s9 = scalar_lea.vmem (!%p746_p3), [#allocation2], %s409_s7 }
  0x24   : > { %645 = dma.done.wait (%p774_p13), %s206_s8, 128  }
  0x25   : > { %647 = vsyncadd (%p774_p13), %s206_s8, 4294967168 }
  0x26   : > { %649 = dma.done.wait (%p738_p1), [#allocation6], 2176  }
  0x27   : > { %651 = vsyncadd (%p738_p1), [#allocation6], 4294965120  ;;  %v259_v0 = vld [vmem:[#allocation5 + $0x78] sm:$0xff]  ;;  %v258_v1 = vld [vmem:[#allocation5 + $0x70] sm:$0xff]  ;;  %s414_s19 = sshll.u32 %s670_s15, 3  ;;  %s242_s18 = scalar_lea.vmem [#allocation8], %s409_s7 }
  0x28   : > { %261 = vmatpush.msra.mxu0 %v259_v0  ;;  %v257_v2 = vld [vmem:[#allocation5 + $0x68] sm:$0xff]  ;;  %v256_v3 = vld [vmem:[#allocation5 + $0x60] sm:$0xff]  ;;  %v255_v4 = vld [vmem:[#allocation5 + $0x58] sm:$0xff]  ;;  %s294_s22 = scalar_lea.hbm %s858_s3, %s414_s19  ;;  %s296_s24 = sshll.u32 %s242_s18, 4  ;;  %s297_s24 = int_to_ptr.vmem [resolvable:$true] %s296_s24 }
  0x29   : > { %v254_v5 = vld [vmem:[#allocation5 + $0x50] sm:$0xff]  ;;  %v253_v6 = vld [vmem:[#allocation5 + $0x48] sm:$0xff]  ;;  %v252_v7 = vld [vmem:[#allocation5 + $0x40] sm:$0xff]  ;;  %s298_s25 = sshll.u32 %s294_s22, 4  ;;  %s283_s26 = scalar_lea.sflag [#allocation4], %s798_s5  ;;  %s299_s25 = int_to_ptr.hbm [resolvable:$true] %s298_s25 }
  0x2a   : > { %262 = vmatpush.msra.mxu0 %v258_v1  ;;  %v251_v8 = vld [vmem:[#allocation5 + $0x38] sm:$0xff]  ;;  %v250_v9 = vld [vmem:[#allocation5 + $0x30] sm:$0xff]  ;;  %v249_v10 = vld [vmem:[#allocation5 + $0x28] sm:$0xff]  ;;  %s606_s27 = sshra.s32 %s299_s25, 4  ;;  %s612_s30 = scalar_lea.hbm %s858_s3, 16  ;;  %s607_s27 = int_to_ptr.hbm [resolvable:$true] %s606_s27 }
  0x2b   : > { %v248_v11 = vld [vmem:[#allocation5 + $0x20] sm:$0xff]  ;;  %v247_v12 = vld [vmem:[#allocation5 + $0x18] sm:$0xff]  ;;  %v246_v13 = vld [vmem:[#allocation5 + $0x10] sm:$0xff]  ;;  %s608_s28 = scalar_lea.hbm %s607_s27, 8  ;;  %p613_p9 = scmp.lt.s32.totalorder %s607_s27, %s858_s3 }
  0x2c   : > { %263 = vmatpush.msra.mxu0 %v257_v2  ;;  %v245_v14 = vld [vmem:[#allocation5 + $0x8] sm:$0xff]  ;;  %v244_v15 = vld [vmem:[#allocation5] sm:$0xff]  ;;  %v243_v16 = vld [vmem:[%s804_s9] sm:$0xff]  ;;  %p609_p1 = scmp.ne.s32.totalorder %s607_s27, %s608_s28  ;;  %p614_p10 = scmp.lt.s32.totalorder %s612_s30, %s608_s28 }
  0x2d   : > { %v260_v17 = vld [vmem:[#allocation7] sm:$0xff] }
  0x2e   : > { %264 = vmatpush.msra.mxu0 %v256_v3  ;;  %p610_p3 = pnand %p609_p1, %p778_p0  ;;  %p615_p12 = por %p614_p10, %p613_p9 }
  0x30   : > { %265 = vmatpush.msra.mxu0 %v255_v4  ;;  %p611_p8 = pneg %p610_p3 }
  0x32   : > { %266 = vmatpush.msra.mxu0 %v254_v5  ;;  %p616_p13 = pnand %p615_p12, %p611_p8 }
  0x34   : > { %267 = vmatpush.msra.mxu0 %v253_v6 }
  0x36   : > { %268 = vmatpush.msra.mxu0 %v252_v7 }
  0x38   : > { %269 = vmatpush.msra.mxu0 %v251_v8 }
  0x3a   : > { %270 = vmatpush.msra.mxu0 %v250_v9 }
  0x3c   : > { %271 = vmatpush.msra.mxu0 %v249_v10 }
  0x3e   : > { %272 = vmatpush.msra.mxu0 %v248_v11 }
  0x40   : > { %273 = vmatpush.msra.mxu0 %v247_v12 }
  0x42   : > { %274 = vmatpush.msra.mxu0 %v246_v13 }
  0x44   : > { %275 = vmatpush.msra.mxu0 %v245_v14 }
  0x46   : > { %276 = vmatpush.msra.mxu0 %v244_v15 }
  0x47   : > { %277 = vmatmul.f32.vlgmr.msra.gmra.mxu0 %v243_v16 }
  0xc4   : > { %v278_v18 = vpop.f32.mrf.mxu0 }
  0xc5   : > { %v279_v19 = vadd.f32 %v278_v18, %v260_v17 }
  0xc7   : > { %281 = vst [vmem:[%s242_s18] sm:$0xff] %v279_v19 }
  0xc8   : > { %619 = shalt.err (!%p616_p13)
}
  0xc9   : > { %427 = dma.vmem_to_hbm [thread:$0]  (%p778_p0), %s297_s24, 128, %s299_s25, %s283_s26  }
  0xca PF: > { %s310_s5 = sand.u32 1, %s658_s12   ;;  %p441_p2 = pnand %p405_p6, %p785_p5 }
  0xcb   : > { %s311_s8 = scalar_lea.sflag [#allocation4], %s310_s5 }
  0xcc   : > { %p442_p4 = pneg %p441_p2 }
  0xce   : > { %653 = dma.done.wait (%p442_p4), %s311_s8, 128  }
  0xcf   : > { %655 = vsyncadd (%p442_p4), %s311_s8, 4294967168  ;;  %s20_s17 = sadd.s32 1, %s678_s17   ;;  %s864_s12 = smov %s662_s13 }
  0xd0   : > { %p17_p7 = scmp.ge.s32.totalorder %s20_s17, 4   ;;  %s865_s13 = smov %s666_s14 }
  0xd1   : > { %s866_s14 = smov %s783_s20  ;;  %s867_s15 = smov %s674_s16 }
  0xd2   : > { %s868_s16 = smov %s870_s6  ;;  %19 = sbr.rel (!%p17_p7) target bundleno = 7 (0x7), region = 86 }
  0xd7   :  { %317 = vsyncpa [#allocation3], 1 }
  0xd8   :  { %319 = vsyncpa [#allocation3 + $0x1], 1 }
  0xd9   :  { %320 = vsyncpa [#allocation6], 1 }
  0xda   :  { %321 = vsyncpa [#allocation4], 1 }
  0xdb   :  { %323 = vsyncpa [#allocation4 + $0x1], 1 }

</bundles_post_ra>
